<compile_context>
chip_gen: v6e
topology: v6e:2x2x1
jax: 0.10.0
libtpu: 0.0.40
codegen_flags: <defaults>
</compile_context>

<pallas_src>
import functools

import jax
import jax.numpy as jnp
from jax import lax
from jax.experimental import pallas as pl
from jax.experimental.pallas import tpu as pltpu

_LANE = 128
_SUBLANE = 8
_CHUNK = 128      # rows per inner sub-chunk (keeps h1/h2 at 16 f32 vregs each)
_MAX_TM = 512     # max rows per grid step (4 sub-chunks)


def _round_up(n, m):
    return ((n + m - 1) // m) * m


def _cdiv(a, b):
    return -(-a // b)


def _choose_tiling(batch):
    """Pick (tm, batch_pad): big tiles to cut grid steps, but keep >=2 grid steps
    whenever the batch spans >=2x128 rows so both v7x TensorCores get work."""
    b8 = _round_up(batch, _SUBLANE)
    if b8 <= _CHUNK:
        tm = b8
    else:
        n128 = _cdiv(b8, _CHUNK)                      # number of 128-row chunks
        chunks_per_step = min(_MAX_TM // _CHUNK, max(1, n128 // 2))
        tm = chunks_per_step * _CHUNK
    batch_pad = _round_up(b8, tm)
    return tm, batch_pad


def _dqn_kernel(x_ref, w1_ref, b1_ref, w2_ref, b2_ref, w3_ref, b3_ref, o_ref):
    # Weights/biases are VMEM-resident across the whole grid (constant index_map).
    w1 = w1_ref[...]
    b1 = b1_ref[...]
    w2 = w2_ref[...]
    b2 = b2_ref[...]
    w3 = w3_ref[...]
    b3 = b3_ref[...]

    def run_rows(row_start, nrows):
        # bf16 MXU inputs, f32 accumulate, f32 elementwise bias/ReLU (v5e-friendly).
        xs = x_ref[pl.ds(row_start, nrows), :].astype(jnp.bfloat16)
        h1 = jnp.dot(xs, w1, preferred_element_type=jnp.float32)
        h1 = jnp.maximum(h1 + b1, 0.0)
        h2 = jnp.dot(h1.astype(jnp.bfloat16), w2, preferred_element_type=jnp.float32)
        h2 = jnp.maximum(h2 + b2, 0.0)
        out = jnp.dot(h2.astype(jnp.bfloat16), w3, preferred_element_type=jnp.float32)
        # Lane-dense (nrows, 128) unmasked store, bf16 writeback.
        o_ref[pl.ds(row_start, nrows), :] = (out + b3).astype(o_ref.dtype)

    tm = x_ref.shape[0]
    if tm <= _CHUNK:
        run_rows(0, tm)
    else:
        n_chunks = tm // _CHUNK

        def body(c, carry):
            run_rows(pl.multiple_of(c * _CHUNK, _CHUNK), _CHUNK)
            return carry

        lax.fori_loop(0, n_chunks, body, None, unroll=True)


def prepare_params(w1, b1, w2, b2, w3, b3):
    """One-time parameter prep (run once after init / checkpoint load, NOT per forward):
    bf16 casts of w1/w2/w3 and zero-pad of the last layer to a lane-dense 128 columns."""
    hidden_dim = w1.shape[1]
    output_dim = w3.shape[1]
    out_pad = _round_up(output_dim, _LANE)
    w3_p = jnp.zeros((hidden_dim, out_pad), jnp.bfloat16).at[:, :output_dim].set(
        w3.astype(jnp.bfloat16))
    b3_p = jnp.zeros((1, out_pad), jnp.float32).at[:, :output_dim].set(
        b3.astype(jnp.float32))
    return (w1.astype(jnp.bfloat16), b1.astype(jnp.float32),
            w2.astype(jnp.bfloat16), b2.astype(jnp.float32),
            w3_p, b3_p)


@functools.partial(jax.jit, static_argnames=("output_dim",))
def dqn_forward(x, params, *, output_dim=4):
    """3-layer MLP forward fused into one Pallas kernel.

    x: (batch, input_dim) f32. `params` comes from prepare_params().
    Returns (batch, output_dim) f32.
    """
    w1, b1, w2, b2, w3_p, b3_p = params
    batch, input_dim = x.shape
    hidden_dim = w1.shape[1]
    out_pad = w3_p.shape[1]

    tm, batch_pad = _choose_tiling(batch)

    if batch_pad == batch:
        # No pad copy; kernel casts x at the MXU boundary (cheap on a (tm, 8) tile).
        x_in = x
    else:
        # Single fused pad + f32->bf16 cast (halves x DMA bytes into VMEM).
        x_in = jnp.zeros((batch_pad, input_dim), jnp.bfloat16).at[:batch].set(
            x.astype(jnp.bfloat16))

    grid = (batch_pad // tm,)
    out_padded = pl.pallas_call(
        _dqn_kernel,
        out_shape=jax.ShapeDtypeStruct((batch_pad, out_pad), jnp.bfloat16),
        grid=grid,
        in_specs=[
            pl.BlockSpec((tm, input_dim), lambda i: (i, 0)),           # x tile (streamed)
            pl.BlockSpec((input_dim, hidden_dim), lambda i: (0, 0)),   # w1 (VMEM-resident)
            pl.BlockSpec((1, hidden_dim), lambda i: (0, 0)),           # b1
            pl.BlockSpec((hidden_dim, hidden_dim), lambda i: (0, 0)),  # w2
            pl.BlockSpec((1, hidden_dim), lambda i: (0, 0)),           # b2
            pl.BlockSpec((hidden_dim, out_pad), lambda i: (0, 0)),     # w3 (padded cols)
            pl.BlockSpec((1, out_pad), lambda i: (0, 0)),              # b3 (padded cols)
        ],
        out_specs=pl.BlockSpec((tm, out_pad), lambda i: (i, 0)),
        compiler_params=pltpu.CompilerParams(
            dimension_semantics=("parallel",)),
    )(x_in, w1, b1, w2, b2, w3_p, b3_p)

    # Single slice+cast HLO back to the real (batch, output_dim) f32 result.
    return out_padded[:batch, :output_dim].astype(jnp.float32)


def init_dqn_params(key, input_dim=8, hidden_dim=128, output_dim=4):
    """Deterministic PyTorch-style (uniform +/- 1/sqrt(fan_in)) initialization."""
    def linear_init(k, fan_in, fan_out):
        kw, kb = jax.random.split(k)
        bound = 1.0 / jnp.sqrt(fan_in)
        w = jax.random.uniform(kw, (fan_in, fan_out), jnp.float32, -bound, bound)
        b = jax.random.uniform(kb, (1, fan_out), jnp.float32, -bound, bound)
        return w, b

    k1, k2, k3 = jax.random.split(key, 3)
    w1, b1 = linear_init(k1, input_dim, hidden_dim)
    w2, b2 = linear_init(k2, hidden_dim, hidden_dim)
    w3, b3 = linear_init(k3, hidden_dim, output_dim)
    return w1, b1, w2, b2, w3, b3


def reference_forward_f32(x, w1, b1, w2, b2, w3, b3):
    h1 = jnp.maximum(x @ w1 + b1, 0.0)
    h2 = jnp.maximum(h1 @ w2 + b2, 0.0)
    return h2 @ w3 + b3


def reference_forward_bf16(x, w1, b1, w2, b2, w3, b3):
    bf = jnp.bfloat16
    h1 = jnp.dot(x.astype(bf), w1.astype(bf), preferred_element_type=jnp.float32)
    h1 = jnp.maximum(h1 + b1, 0.0)
    h2 = jnp.dot(h1.astype(bf), w2.astype(bf), preferred_element_type=jnp.float32)
    h2 = jnp.maximum(h2 + b2, 0.0)
    out = jnp.dot(h2.astype(bf), w3.astype(bf), preferred_element_type=jnp.float32)
    return out + b3


if __name__ == "__main__":
    key = jax.random.PRNGKey(0)
    kx, kp, kx2, kx3 = jax.random.split(key, 4)

    batch, input_dim, hidden_dim, output_dim = 2, 8, 128, 4
    raw_params = init_dqn_params(kp, input_dim, hidden_dim, output_dim)
    params = prepare_params(*raw_params)          # one-time prep, outside the call path

    def check(x, out, atol_bf=2e-2, atol_f32=5e-2):
        ref_bf16 = reference_forward_bf16(x, *raw_params)
        ref_f32 = reference_forward_f32(x, *raw_params)
        assert jnp.allclose(out, ref_bf16, atol=atol_bf, rtol=atol_bf), \
            "mismatch vs bf16-matmul reference"
        assert jnp.allclose(out, ref_f32, atol=atol_f32, rtol=atol_f32), \
            "mismatch vs f32 reference"

    # Small batch (single grid step, padded to an (8, 128) tile; padded x path).
    x = jax.random.normal(kx, (batch, input_dim), dtype=jnp.float32)
    out = jax.block_until_ready(dqn_forward(x, params, output_dim=output_dim))
    assert out.shape == (batch, output_dim), out.shape
    check(x, out)

    # Replay-buffer style batch: 2 grid steps of 128 rows, no x pad copy.
    big_batch = 256
    xb = jax.random.normal(kx2, (big_batch, input_dim), dtype=jnp.float32)
    outb = jax.block_until_ready(dqn_forward(xb, params, output_dim=output_dim))
    assert outb.shape == (big_batch, output_dim), outb.shape
    check(xb, outb)

    # Very large batch: 2 grid steps of 512 rows, 4x128-row sub-chunks per step.
    huge_batch = 1024
    xh = jax.random.normal(kx3, (huge_batch, input_dim), dtype=jnp.float32)
    outh = jax.block_until_ready(dqn_forward(xh, params, output_dim=output_dim))
    assert outh.shape == (huge_batch, output_dim), outh.shape
    check(xh, outh)

    print("KERNEL_OK")
</pallas_src>

<mosaic_0001>
module attributes {stable_mosaic.version = 11 : i64} {
  func.func @_dqn_kernel(%arg0: i32, %arg1: memref<8x8xbf16, #tpu.memory_space<vmem>>, %arg2: memref<8x128xbf16, #tpu.memory_space<vmem>>, %arg3: memref<1x128xf32, #tpu.memory_space<vmem>>, %arg4: memref<128x128xbf16, #tpu.memory_space<vmem>>, %arg5: memref<1x128xf32, #tpu.memory_space<vmem>>, %arg6: memref<128x128xbf16, #tpu.memory_space<vmem>>, %arg7: memref<1x128xf32, #tpu.memory_space<vmem>>, %arg8: memref<8x128xbf16, #tpu.memory_space<vmem>>) attributes {dimension_semantics = [#tpu.dimension_semantics<parallel>], iteration_bounds = array<i64: 1>, scalar_prefetch = 0 : i64, scratch_operands = 0 : i64, tpu.core_type = #tpu.core_type<tc>, window_params = [{transform_indices = @transform_0, window_bounds = array<i64: 8, 8>}, {pipeline_mode = #tpu.pipeline_mode<synchronous>, transform_indices = @transform_1, window_bounds = array<i64: 8, 128>}, {pipeline_mode = #tpu.pipeline_mode<synchronous>, transform_indices = @transform_2, window_bounds = array<i64: 1, 128>}, {pipeline_mode = #tpu.pipeline_mode<synchronous>, transform_indices = @transform_3, window_bounds = array<i64: 128, 128>}, {pipeline_mode = #tpu.pipeline_mode<synchronous>, transform_indices = @transform_4, window_bounds = array<i64: 1, 128>}, {pipeline_mode = #tpu.pipeline_mode<synchronous>, transform_indices = @transform_5, window_bounds = array<i64: 128, 128>}, {pipeline_mode = #tpu.pipeline_mode<synchronous>, transform_indices = @transform_6, window_bounds = array<i64: 1, 128>}, {transform_indices = @transform_7, window_bounds = array<i64: 8, 128>}]} {
    %c0 = arith.constant 0 : index
    %c0_0 = arith.constant 0 : index
    %0 = vector.load %arg2[%c0, %c0_0] : memref<8x128xbf16, #tpu.memory_space<vmem>>, vector<8x128xbf16>
    %c0_1 = arith.constant 0 : index
    %c0_2 = arith.constant 0 : index
    %1 = vector.load %arg3[%c0_1, %c0_2] : memref<1x128xf32, #tpu.memory_space<vmem>>, vector<1x128xf32>
    %c0_3 = arith.constant 0 : index
    %c0_4 = arith.constant 0 : index
    %2 = vector.load %arg4[%c0_3, %c0_4] : memref<128x128xbf16, #tpu.memory_space<vmem>>, vector<128x128xbf16>
    %c0_5 = arith.constant 0 : index
    %c0_6 = arith.constant 0 : index
    %3 = vector.load %arg5[%c0_5, %c0_6] : memref<1x128xf32, #tpu.memory_space<vmem>>, vector<1x128xf32>
    %c0_7 = arith.constant 0 : index
    %c0_8 = arith.constant 0 : index
    %4 = vector.load %arg6[%c0_7, %c0_8] : memref<128x128xbf16, #tpu.memory_space<vmem>>, vector<128x128xbf16>
    %c0_9 = arith.constant 0 : index
    %c0_10 = arith.constant 0 : index
    %5 = vector.load %arg7[%c0_9, %c0_10] : memref<1x128xf32, #tpu.memory_space<vmem>>, vector<1x128xf32>
    %c0_11 = arith.constant 0 : index
    %c0_12 = arith.constant 0 : index
    %6 = vector.load %arg1[%c0_11, %c0_12] : memref<8x8xbf16, #tpu.memory_space<vmem>>, vector<8x8xbf16>
    %cst = arith.constant dense<0.000000e+00> : vector<8x128xf32>
    %7 = tpu.matmul %6, %0, %cst {dimension_numbers = #tpu.dot_dimension_numbers<[1], [0], [0], [1], [0, 0, 1, 1], [], []>} : vector<8x8xbf16>, vector<8x128xbf16>, vector<8x128xf32> -> vector<8x128xf32>
    %8 = vector.broadcast %1 : vector<1x128xf32> to vector<8x128xf32>
    %9 = arith.addf %7, %8 : vector<8x128xf32>
    %cst_13 = arith.constant 0.000000e+00 : f32
    %10 = vector.broadcast %cst_13 : f32 to vector<8x128xf32>
    %11 = arith.maximumf %9, %10 : vector<8x128xf32>
    %12 = arith.truncf %11 : vector<8x128xf32> to vector<8x128xbf16>
    %cst_14 = arith.constant dense<0.000000e+00> : vector<8x128xf32>
    %13 = tpu.matmul %12, %2, %cst_14 {dimension_numbers = #tpu.dot_dimension_numbers<[1], [0], [0], [1], [0, 0, 1, 1], [], []>} : vector<8x128xbf16>, vector<128x128xbf16>, vector<8x128xf32> -> vector<8x128xf32>
    %14 = vector.broadcast %3 : vector<1x128xf32> to vector<8x128xf32>
    %15 = arith.addf %13, %14 : vector<8x128xf32>
    %cst_15 = arith.constant 0.000000e+00 : f32
    %16 = vector.broadcast %cst_15 : f32 to vector<8x128xf32>
    %17 = arith.maximumf %15, %16 : vector<8x128xf32>
    %18 = arith.truncf %17 : vector<8x128xf32> to vector<8x128xbf16>
    %cst_16 = arith.constant dense<0.000000e+00> : vector<8x128xf32>
    %19 = tpu.matmul %18, %4, %cst_16 {dimension_numbers = #tpu.dot_dimension_numbers<[1], [0], [0], [1], [0, 0, 1, 1], [], []>} : vector<8x128xbf16>, vector<128x128xbf16>, vector<8x128xf32> -> vector<8x128xf32>
    %20 = vector.broadcast %5 : vector<1x128xf32> to vector<8x128xf32>
    %21 = arith.addf %19, %20 : vector<8x128xf32>
    %22 = arith.truncf %21 : vector<8x128xf32> to vector<8x128xbf16>
    %c0_17 = arith.constant 0 : index
    %c0_18 = arith.constant 0 : index
    %23 = vector.load %arg8[%c0_17, %c0_18] : memref<8x128xbf16, #tpu.memory_space<vmem>>, vector<8x128xbf16>
    tpu.vector_store %arg8[%c0_17, %c0_18], %22 {strides = array<i32>} : memref<8x128xbf16, #tpu.memory_space<vmem>>, vector<8x128xbf16>,
    return
  }
  func.func @transform_0(%arg0: i32) -> (i32, i32) {
    %c0_i32 = arith.constant 0 : i32
    %c0_i32_0 = arith.constant 0 : i32
    return %arg0, %c0_i32 : i32, i32
  }
  func.func @transform_1(%arg0: i32) -> (i32, i32) {
    %c0_i32 = arith.constant 0 : i32
    %c0_i32_0 = arith.constant 0 : i32
    %c0_i32_1 = arith.constant 0 : i32
    return %c0_i32, %c0_i32_0 : i32, i32
  }
  func.func @transform_2(%arg0: i32) -> (i32, i32) {
    %c0_i32 = arith.constant 0 : i32
    %c0_i32_0 = arith.constant 0 : i32
    %c0_i32_1 = arith.constant 0 : i32
    return %c0_i32, %c0_i32_0 : i32, i32
  }
  func.func @transform_3(%arg0: i32) -> (i32, i32) {
    %c0_i32 = arith.constant 0 : i32
    %c0_i32_0 = arith.constant 0 : i32
    %c0_i32_1 = arith.constant 0 : i32
    return %c0_i32, %c0_i32_0 : i32, i32
  }
  func.func @transform_4(%arg0: i32) -> (i32, i32) {
    %c0_i32 = arith.constant 0 : i32
    %c0_i32_0 = arith.constant 0 : i32
    %c0_i32_1 = arith.constant 0 : i32
    return %c0_i32, %c0_i32_0 : i32, i32
  }
  func.func @transform_5(%arg0: i32) -> (i32, i32) {
    %c0_i32 = arith.constant 0 : i32
    %c0_i32_0 = arith.constant 0 : i32
    %c0_i32_1 = arith.constant 0 : i32
    return %c0_i32, %c0_i32_0 : i32, i32
  }
  func.func @transform_6(%arg0: i32) -> (i32, i32) {
    %c0_i32 = arith.constant 0 : i32
    %c0_i32_0 = arith.constant 0 : i32
    %c0_i32_1 = arith.constant 0 : i32
    return %c0_i32, %c0_i32_0 : i32, i32
  }
  func.func @transform_7(%arg0: i32) -> (i32, i32) {
    %c0_i32 = arith.constant 0 : i32
    %c0_i32_0 = arith.constant 0 : i32
    return %arg0, %c0_i32 : i32, i32
  }
}

</mosaic_0001>

<bundles_post_ra>
// kernel: dqn_forward.1
= control target key start
LH: loop header
LB: loop body
LE: loop exit
PB: predicated region body
PF: predicated region fallthrough
CT: control target
= control target key end

     0   :  { %12 = vsyncpa [#allocation3], 0  ;;  %s591_s0 = inlined_call_operand.vmem [shape: bf16[8,8], index: 0, kind: input, shape index: {}]   ;;  %s592_s1 = inlined_call_operand.vmem [shape: bf16[8,128], index: 1, kind: input, shape index: {}]   ;;  %s593_s2 = inlined_call_operand.vmem [shape: f32[1,128], index: 2, kind: input, shape index: {}]   ;;  %s594_s3 = inlined_call_operand.hbm [shape: bf16[128,128], index: 3, kind: input, shape index: {}]   ;;  %s595_s4 = inlined_call_operand.vmem [shape: f32[1,128], index: 4, kind: input, shape index: {}]   ;;  %s596_s5 = inlined_call_operand.hbm [shape: bf16[128,128], index: 5, kind: input, shape index: {}]   ;;  %s597_s6 = inlined_call_operand.vmem [shape: f32[1,128], index: 6, kind: input, shape index: {}]   ;;  %s598_s7 = inlined_call_operand.vmem [shape: bf16[8,128], index: 7, kind: output, shape index: {}]  }
   0x1   :  { %13 = vsyncpa [#allocation5], 0  ;;  %s498_s24 = smov [#allocation2]  }
   0x2   :  { %s25_s25 = sshll.u32 %s498_s24, 4  ;;  %s26_s25 = int_to_ptr.vmem [resolvable:$true] %s25_s25 }
   0x3   :  { %s462_s26 = scalar_lea.vmem %s26_s25, 1024  ;;  %p467_p1 = scmp.lt.s32.totalorder %s26_s25, %s26_s25 }
   0x4   :  { %p463_p0 = scmp.ne.s32.totalorder %s26_s25, %s462_s26  ;;  %p468_p2 = scmp.lt.s32.totalorder %s462_s26, %s462_s26 }
   0x6   :  { %p469_p3 = por %p468_p2, %p467_p1 }
   0x8   :  { %p470_p4 = pnand %p469_p3, %p463_p0 }
   0xa   :  { %473 = shalt.err (!%p470_p4)
}
   0xb   :  { %s499_s27 = smov 64   ;;  %s500_s28 = smov 4  }
   0xc   :  { %31 = dma.hbm_to_vmem [thread:$0]  %s594_s3, 1024, %s26_s25, [#allocation3], %s499_s27, %s499_s27, %s500_s28  }
   0xd   :  { %s501_s8 = smov [#allocation4]  }
   0xe   :  { %s39_s9 = sshll.u32 %s501_s8, 4  ;;  %s40_s9 = int_to_ptr.vmem [resolvable:$true] %s39_s9 }
   0xf   :  { %s482_s10 = scalar_lea.vmem %s40_s9, 1024  ;;  %p487_p6 = scmp.lt.s32.totalorder %s40_s9, %s40_s9 }
  0x10   :  { %p483_p5 = scmp.ne.s32.totalorder %s40_s9, %s482_s10  ;;  %p488_p7 = scmp.lt.s32.totalorder %s482_s10, %s482_s10 }
  0x12   :  { %p489_p8 = por %p488_p7, %p487_p6 }
  0x14   :  { %p490_p9 = pnand %p489_p8, %p483_p5 }
  0x16   :  { %493 = shalt.err (!%p490_p9)
}
  0x17   :  { %45 = dma.hbm_to_vmem [thread:$0]  %s596_s5, 1024, %s40_s9, [#allocation5], %s499_s27, %s499_s27, %s500_s28  }
  0x18   :  { %494 = dma.done.wait [#allocation3], 1024  }
  0x19   :  { %495 = vsyncadd [#allocation3], 4294966272 }
  0x1a   :  { %496 = dma.done.wait [#allocation5], 1024  }
  0x1b   :  { %497 = vsyncadd [#allocation5], 4294966272  ;;  %v502_v0 = vmov 0.0   ;;  %vm503_vm0 = vmmov 0   ;;  %vm102_vm1 = vcmask 1043456   ;;  %vm98_vm2 = vcmask 64512  }
  0x1c   :  { %386 = vmatprep.subr.bf16.mxu0 %v502_v0  ;;  %388 = vmatprep.mubr.msk.bf16.mxu0 %vm503_vm0, %v502_v0  ;;  %v55_v1 = vld [vmem:[%s592_s1] sm:$0xf]  ;;  %v438_v3 = vld [vmem:[#allocation2 + $0x38] sm:$0xff]   ;;  %v439_v5 = vld [vmem:[#allocation2 + $0x30] sm:$0xff]  }
  0x1d   :  { %392 = vmatprep.subr.bf16.mxu1 %v502_v0  ;;  %408 = vmatprep.mubr.msk.bf16.mxu1 %vm503_vm0, %v502_v0  ;;  %v104_v2 = vsel %vm102_vm1, %v55_v1, 0  ;;  %v91_v4 = vld [vmem:[%s591_s0] sm:$0xf]  ;;  %v440_v6 = vld [vmem:[#allocation2 + $0x28] sm:$0xff]   ;;  %v442_v8 = vld [vmem:[#allocation2 + $0x18] sm:$0xff]  }
  0x1e   :  { %387 = vmatpush3.bf16.msra.mxu0 %v104_v2  ;;  %393 = vmatpush3.bf16.msra.mxu1 %v438_v3  ;;  %v441_v7 = vld [vmem:[#allocation2 + $0x20] sm:$0xff]   ;;  %v443_v9 = vld [vmem:[#allocation2 + $0x10] sm:$0xff]   ;;  %v444_v10 = vld [vmem:[#allocation2 + $0x8] sm:$0xff]  }
  0x1f   :  { %412 = vmatprep.subr.bf16.mxu0 %v502_v0  ;;  %394 = vmatprep.subr.bf16.mxu1 %v502_v0  ;;  %v445_v11 = vld [vmem:[#allocation2] sm:$0xff]   ;;  %v446_v12 = vld [vmem:[#allocation4 + $0x38] sm:$0xff]   ;;  %v447_v13 = vld [vmem:[#allocation4 + $0x30] sm:$0xff]  }
  0x20   :  { %v448_v14 = vld [vmem:[#allocation4 + $0x28] sm:$0xff]   ;;  %v449_v15 = vld [vmem:[#allocation4 + $0x20] sm:$0xff]   ;;  %v450_v16 = vld [vmem:[#allocation4 + $0x18] sm:$0xff]  }
  0x21   :  { %389 = vmatmul.mubr.msk.bf16.vlgmr.msra.gmra.mxu0 %vm98_vm2, %v91_v4  ;;  %v451_v17 = vld [vmem:[#allocation4 + $0x10] sm:$0xff]   ;;  %v346_v18 = vld [vmem:[%s593_s2] ss:$0 sm:$0xff]  ;;  %v452_v26 = vld [vmem:[#allocation4 + $0x8] sm:$0xff]  }
  0x22   :  { %428 = vmatprep.mubr.msk.bf16.mxu0 %vm503_vm0, %v502_v0  ;;  %395 = vmatpush3.bf16.msra.mxu1 %v439_v5  ;;  %v453_v27 = vld [vmem:[#allocation4] sm:$0xff]  }
  0x23   :  { %396 = vmatprep.subr.bf16.mxu1 %v502_v0  ;;  %413 = vmatpush3.bf16.msra.mxu0 %v446_v12  ;;  %v348_v28 = vld [vmem:[%s595_s4] ss:$0 sm:$0xff] }
  0x24   :  { %414 = vmatprep.subr.bf16.mxu0 %v502_v0  ;;  %v357_v36 = vld [vmem:[%s597_s6] ss:$0 sm:$0xff] }
  0x26   :  { %397 = vmatpush3.bf16.msra.mxu1 %v440_v6 }
  0x27   :  { %398 = vmatprep.subr.bf16.mxu1 %v502_v0  ;;  %415 = vmatpush3.bf16.msra.mxu0 %v447_v13 }
  0x28   :  { %416 = vmatprep.subr.bf16.mxu0 %v502_v0 }
  0x2a   :  { %399 = vmatpush3.bf16.msra.mxu1 %v441_v7 }
  0x2b   :  { %400 = vmatprep.subr.bf16.mxu1 %v502_v0  ;;  %417 = vmatpush3.bf16.msra.mxu0 %v448_v14 }
  0x2c   :  { %418 = vmatprep.subr.bf16.mxu0 %v502_v0 }
  0x2e   :  { %401 = vmatpush3.bf16.msra.mxu1 %v442_v8 }
  0x2f   :  { %402 = vmatprep.subr.bf16.mxu1 %v502_v0  ;;  %419 = vmatpush3.bf16.msra.mxu0 %v449_v15 }
  0x30   :  { %420 = vmatprep.subr.bf16.mxu0 %v502_v0 }
  0x32   :  { %403 = vmatpush3.bf16.msra.mxu1 %v443_v9 }
  0x33   :  { %404 = vmatprep.subr.bf16.mxu1 %v502_v0  ;;  %421 = vmatpush3.bf16.msra.mxu0 %v450_v16 }
  0x34   :  { %422 = vmatprep.subr.bf16.mxu0 %v502_v0 }
  0x36   :  { %405 = vmatpush3.bf16.msra.mxu1 %v444_v10 }
  0x37   :  { %406 = vmatprep.subr.bf16.mxu1 %v502_v0  ;;  %423 = vmatpush3.bf16.msra.mxu0 %v451_v17 }
  0x38   :  { %424 = vmatprep.subr.bf16.mxu0 %v502_v0 }
  0x3a   :  { %407 = vmatpush3.bf16.msra.mxu1 %v445_v11 }
  0x3b   :  { %425 = vmatpush3.bf16.msra.mxu0 %v452_v26 }
  0x3c   :  { %426 = vmatprep.subr.bf16.mxu0 %v502_v0 }
  0x3f   :  { %427 = vmatpush3.bf16.msra.mxu0 %v453_v27 }
  0xe1   :  { %v140_v19 = vpop.f32.mrf.mxu0 }
  0xe2   :  { %v141_v20 = vadd.f32 %v346_v18, %v140_v19 }
  0xe3   :  { %v390_v21 = vpop.f32.mrf.mxu0 }
  0xe4   :  { %v146_v22 = vmax.f32 %v141_v20, 0.0 }
  0xe5   :  { %v143_v23 = vpop.f32.mrf.mxu0 }
  0xe6   :  { %v147_v24 = vpack.c.bf16 %v146_v22, %v146_v22 }
  0xe7   :  { %v391_v25 = vpop.f32.mrf.mxu0 }
  0xe8   :  { %409 = vmatmul.mubr.bf16.vlgmr.msra.gmra.mxu1 %v147_v24 }
 0x1a8   :  { %v236_v29 = vpop.f32.mrf.mxu1 }
 0x1a9   :  { %v237_v30 = vadd.f32 %v348_v28, %v236_v29 }
 0x1aa   :  { %v410_v31 = vpop.f32.mrf.mxu1 }
 0x1ab   :  { %v242_v32 = vmax.f32 %v237_v30, 0.0 }
 0x1ac   :  { %v239_v33 = vpop.f32.mrf.mxu1 }
 0x1ad   :  { %v243_v34 = vpack.c.bf16 %v242_v32, %v242_v32 }
 0x1ae   :  { %v411_v35 = vpop.f32.mrf.mxu1 }
 0x1af   :  { %429 = vmatmul.mubr.bf16.vlgmr.msra.gmra.mxu0 %v243_v34 }
 0x26f   :  { %v332_v37 = vpop.f32.mrf.mxu0 }
 0x270   :  { %v333_v38 = vadd.f32 %v357_v36, %v332_v37 }
 0x271   :  { %v430_v39 = vpop.f32.mrf.mxu0 }
 0x272   :  { %v338_v40 = vpack.c.bf16 %v333_v38, %v333_v38 }
 0x273   :  { %v335_v41 = vpop.f32.mrf.mxu0 }
 0x274   :  { %339 = vst [vmem:[%s598_s7] sm:$0xf] %v338_v40 }
 0x275   :  { %v431_v42 = vpop.f32.mrf.mxu0 }
 0x276   :  { %344 = vsyncpa [#allocation3], 1 }
 0x277   :  { %345 = vsyncpa [#allocation5], 1 }

</bundles_post_ra>
